<compile_context>
chip_gen: v7x
topology: tpu7x:2x2x1
jax: 0.10.0
libtpu: 0.0.40
codegen_flags: <defaults>
</compile_context>

<pallas_src>
import functools

import jax
import jax.numpy as jnp
from jax.experimental import pallas as pl


def _lcl_kernel(patch_ref, w_ref, b_ref, out_ref):
    # patch_ref: (B, P, L)     with P = Cin*K*K, L = OH*OW
    # w_ref    : (P, Cout, L)
    # b_ref    : (Cout, L)
    # out_ref  : (B, Cout, L)
    B, P, L = patch_ref.shape
    Cout = w_ref.shape[1]

    # Accumulator initialized with the bias (single hoisted broadcast).
    acc = jnp.broadcast_to(b_ref[...][None, :, :], (B, Cout, L)).astype(jnp.float32)

    # VPU contraction over P: each step is a cheap static sublane select plus one
    # broadcast FMA over (B, Cout, L) with L in the lane dimension (few vregs live).
    for p in range(P):
        xp = patch_ref[:, p, :]          # (B, L)
        wp = w_ref[p]                    # (Cout, L)
        acc = acc + xp[:, None, :] * wp[None, :, :]

    out_ref[...] = acc.astype(out_ref.dtype)


@functools.partial(jax.jit, static_argnums=(3, 4, 5))
def locally_connected_forward(x, weights, bias, kernel_size, stride, output_size):
    B, Cin, H, W = x.shape
    OH, OW = output_size
    K = kernel_size
    Cout = weights.shape[-1]
    P = Cin * K * K
    L = OH * OW

    # --- im2col patch extraction (plain-JAX glue; XLA fuses gather+transpose). ---
    # TODO(synk): for production H/W/Cin, move the window extraction inside the
    # kernel (strided ref loads / pl.Element BlockSpecs) to avoid materializing the
    # im2col buffer in HBM; at these toy sizes it is a ~14 KB fused op.
    ii = (jnp.arange(OH) * stride)[:, None] + jnp.arange(K)[None, :]   # (OH, K)
    jj = (jnp.arange(OW) * stride)[:, None] + jnp.arange(K)[None, :]   # (OW, K)
    # advanced indexing -> (B, Cin, OH, K, OW, K)
    gathered = x[:, :, ii[:, :, None, None], jj[None, None, :, :]]
    # -> (B, Cin, K, K, OH, OW) -> (B, P, L)   (L ends up in the lane dim)
    patches = jnp.transpose(gathered, (0, 1, 3, 5, 2, 4)).reshape(B, P, L)

    # weights (OH, OW, Cin, K, K, Cout) -> (Cin, K, K, Cout, OH, OW) -> (P, Cout, L)
    w_flat = jnp.transpose(weights, (2, 3, 4, 5, 0, 1)).reshape(P, Cout, L)
    # bias (OH, OW, Cout) -> (Cout, L)
    b_flat = jnp.transpose(bias, (2, 0, 1)).reshape(Cout, L)

    # TODO(synk): for production sizes on v6e/v7x, cast patches/weights to bf16
    # (keeping the f32 accumulator) and re-introduce a "parallel" grid axis over L
    # so both v7x TensorCores get work; kept f32 / single-step here for exactness
    # at toy sizes.
    out_flat = pl.pallas_call(
        _lcl_kernel,
        out_shape=jax.ShapeDtypeStruct((B, Cout, L), x.dtype),
    )(patches, w_flat, b_flat)

    # (B, Cout, L) -> (B, Cout, OH, OW): pure reshape, no transpose.
    return out_flat.reshape(B, Cout, OH, OW)


if __name__ == "__main__":
    # Small deterministic problem consistent with the module:
    # input_channels=4, output_channels=8, H=W=16, kernel_size=3, stride=2
    # -> output_size = ((16-3)//2 + 1, (16-3)//2 + 1) = (7, 7)
    B, Cin, H, W = 2, 4, 16, 16
    Cout, K, stride = 8, 3, 2
    OH = (H - K) // stride + 1
    OW = (W - K) // stride + 1
    output_size = (OH, OW)

    key = jax.random.PRNGKey(0)
    kx, kw, kb = jax.random.split(key, 3)
    x = jax.random.normal(kx, (B, Cin, H, W), dtype=jnp.float32)
    weights = jax.random.normal(kw, (OH, OW, Cin, K, K, Cout), dtype=jnp.float32)
    bias = jax.random.normal(kb, (OH, OW, Cout), dtype=jnp.float32)

    out = locally_connected_forward(x, weights, bias, K, stride, output_size)
    out = jax.block_until_ready(out)

    # Pure-JAX reference matching the PyTorch loop semantics exactly.
    ref = jnp.zeros((B, Cout, OH, OW), dtype=jnp.float32)
    for i in range(OH):
        for j in range(OW):
            si, sj = i * stride, j * stride
            patch = x[:, :, si:si + K, sj:sj + K]                # (B, Cin, K, K)
            w_ij = weights[i, j]                                  # (Cin, K, K, Cout)
            val = jnp.einsum('bckl,cklo->bo', patch, w_ij) + bias[i, j]
            ref = ref.at[:, :, i, j].set(val)

    assert out.shape == (B, Cout, OH, OW)
    assert jnp.allclose(out, ref, atol=1e-4, rtol=1e-4)
    print("KERNEL_OK")
</pallas_src>

<mosaic_0001>
module attributes {stable_mosaic.version = 11 : i64} {
  func.func @_lcl_kernel(%arg0: memref<2x36x49xf32, #tpu.memory_space<vmem>>, %arg1: memref<36x8x49xf32, #tpu.memory_space<vmem>>, %arg2: memref<8x49xf32, #tpu.memory_space<vmem>>, %arg3: memref<2x8x49xf32, #tpu.memory_space<vmem>>) attributes {dimension_semantics = [], scalar_prefetch = 0 : i64, scratch_operands = 0 : i64, tpu.core_type = #tpu.core_type<tc>} {
    %c0 = arith.constant 0 : index
    %c0_0 = arith.constant 0 : index
    %0 = vector.load %arg2[%c0, %c0_0] : memref<8x49xf32, #tpu.memory_space<vmem>>, vector<8x49xf32>
    %1 = vector.shape_cast %0 : vector<8x49xf32> to vector<1x8x49xf32>
    %2 = vector.shape_cast %1 : vector<1x8x49xf32> to vector<1x8x49xf32>
    %3 = vector.broadcast %2 : vector<1x8x49xf32> to vector<2x8x49xf32>
    %c0_1 = arith.constant 0 : index
    %c0_2 = arith.constant 0 : index
    %c0_3 = arith.constant 0 : index
    %4 = vector.load %arg0[%c0_1, %c0_2, %c0_3] : memref<2x36x49xf32, #tpu.memory_space<vmem>>, vector<2x1x49xf32>
    %5 = vector.shape_cast %4 : vector<2x1x49xf32> to vector<2x49xf32>
    %c0_4 = arith.constant 0 : index
    %c0_5 = arith.constant 0 : index
    %c0_6 = arith.constant 0 : index
    %6 = vector.load %arg1[%c0_4, %c0_5, %c0_6] : memref<36x8x49xf32, #tpu.memory_space<vmem>>, vector<1x8x49xf32>
    %7 = vector.shape_cast %6 : vector<1x8x49xf32> to vector<8x49xf32>
    %8 = vector.shape_cast %5 : vector<2x49xf32> to vector<2x1x49xf32>
    %9 = vector.shape_cast %7 : vector<8x49xf32> to vector<1x8x49xf32>
    %10 = vector.broadcast %8 : vector<2x1x49xf32> to vector<2x8x49xf32>
    %11 = vector.broadcast %9 : vector<1x8x49xf32> to vector<2x8x49xf32>
    %12 = arith.mulf %10, %11 : vector<2x8x49xf32>
    %13 = arith.addf %3, %12 : vector<2x8x49xf32>
    %c0_7 = arith.constant 0 : index
    %c1 = arith.constant 1 : index
    %c0_8 = arith.constant 0 : index
    %14 = vector.load %arg0[%c0_7, %c1, %c0_8] : memref<2x36x49xf32, #tpu.memory_space<vmem>>, vector<2x1x49xf32>
    %15 = vector.shape_cast %14 : vector<2x1x49xf32> to vector<2x49xf32>
    %c1_9 = arith.constant 1 : index
    %c0_10 = arith.constant 0 : index
    %c0_11 = arith.constant 0 : index
    %16 = vector.load %arg1[%c1_9, %c0_10, %c0_11] : memref<36x8x49xf32, #tpu.memory_space<vmem>>, vector<1x8x49xf32>
    %17 = vector.shape_cast %16 : vector<1x8x49xf32> to vector<8x49xf32>
    %18 = vector.shape_cast %15 : vector<2x49xf32> to vector<2x1x49xf32>
    %19 = vector.shape_cast %17 : vector<8x49xf32> to vector<1x8x49xf32>
    %20 = vector.broadcast %18 : vector<2x1x49xf32> to vector<2x8x49xf32>
    %21 = vector.broadcast %19 : vector<1x8x49xf32> to vector<2x8x49xf32>
    %22 = arith.mulf %20, %21 : vector<2x8x49xf32>
    %23 = arith.addf %13, %22 : vector<2x8x49xf32>
    %c0_12 = arith.constant 0 : index
    %c2 = arith.constant 2 : index
    %c0_13 = arith.constant 0 : index
    %24 = vector.load %arg0[%c0_12, %c2, %c0_13] : memref<2x36x49xf32, #tpu.memory_space<vmem>>, vector<2x1x49xf32>
    %25 = vector.shape_cast %24 : vector<2x1x49xf32> to vector<2x49xf32>
    %c2_14 = arith.constant 2 : index
    %c0_15 = arith.constant 0 : index
    %c0_16 = arith.constant 0 : index
    %26 = vector.load %arg1[%c2_14, %c0_15, %c0_16] : memref<36x8x49xf32, #tpu.memory_space<vmem>>, vector<1x8x49xf32>
    %27 = vector.shape_cast %26 : vector<1x8x49xf32> to vector<8x49xf32>
    %28 = vector.shape_cast %25 : vector<2x49xf32> to vector<2x1x49xf32>
    %29 = vector.shape_cast %27 : vector<8x49xf32> to vector<1x8x49xf32>
    %30 = vector.broadcast %28 : vector<2x1x49xf32> to vector<2x8x49xf32>
    %31 = vector.broadcast %29 : vector<1x8x49xf32> to vector<2x8x49xf32>
    %32 = arith.mulf %30, %31 : vector<2x8x49xf32>
    %33 = arith.addf %23, %32 : vector<2x8x49xf32>
    %c0_17 = arith.constant 0 : index
    %c3 = arith.constant 3 : index
    %c0_18 = arith.constant 0 : index
    %34 = vector.load %arg0[%c0_17, %c3, %c0_18] : memref<2x36x49xf32, #tpu.memory_space<vmem>>, vector<2x1x49xf32>
    %35 = vector.shape_cast %34 : vector<2x1x49xf32> to vector<2x49xf32>
    %c3_19 = arith.constant 3 : index
    %c0_20 = arith.constant 0 : index
    %c0_21 = arith.constant 0 : index
    %36 = vector.load %arg1[%c3_19, %c0_20, %c0_21] : memref<36x8x49xf32, #tpu.memory_space<vmem>>, vector<1x8x49xf32>
    %37 = vector.shape_cast %36 : vector<1x8x49xf32> to vector<8x49xf32>
    %38 = vector.shape_cast %35 : vector<2x49xf32> to vector<2x1x49xf32>
    %39 = vector.shape_cast %37 : vector<8x49xf32> to vector<1x8x49xf32>
    %40 = vector.broadcast %38 : vector<2x1x49xf32> to vector<2x8x49xf32>
    %41 = vector.broadcast %39 : vector<1x8x49xf32> to vector<2x8x49xf32>
    %42 = arith.mulf %40, %41 : vector<2x8x49xf32>
    %43 = arith.addf %33, %42 : vector<2x8x49xf32>
    %c0_22 = arith.constant 0 : index
    %c4 = arith.constant 4 : index
    %c0_23 = arith.constant 0 : index
    %44 = vector.load %arg0[%c0_22, %c4, %c0_23] : memref<2x36x49xf32, #tpu.memory_space<vmem>>, vector<2x1x49xf32>
    %45 = vector.shape_cast %44 : vector<2x1x49xf32> to vector<2x49xf32>
    %c4_24 = arith.constant 4 : index
    %c0_25 = arith.constant 0 : index
    %c0_26 = arith.constant 0 : index
    %46 = vector.load %arg1[%c4_24, %c0_25, %c0_26] : memref<36x8x49xf32, #tpu.memory_space<vmem>>, vector<1x8x49xf32>
    %47 = vector.shape_cast %46 : vector<1x8x49xf32> to vector<8x49xf32>
    %48 = vector.shape_cast %45 : vector<2x49xf32> to vector<2x1x49xf32>
    %49 = vector.shape_cast %47 : vector<8x49xf32> to vector<1x8x49xf32>
    %50 = vector.broadcast %48 : vector<2x1x49xf32> to vector<2x8x49xf32>
    %51 = vector.broadcast %49 : vector<1x8x49xf32> to vector<2x8x49xf32>
    %52 = arith.mulf %50, %51 : vector<2x8x49xf32>
    %53 = arith.addf %43, %52 : vector<2x8x49xf32>
    %c0_27 = arith.constant 0 : index
    %c5 = arith.constant 5 : index
    %c0_28 = arith.constant 0 : index
    %54 = vector.load %arg0[%c0_27, %c5, %c0_28] : memref<2x36x49xf32, #tpu.memory_space<vmem>>, vector<2x1x49xf32>
    %55 = vector.shape_cast %54 : vector<2x1x49xf32> to vector<2x49xf32>
    %c5_29 = arith.constant 5 : index
    %c0_30 = arith.constant 0 : index
    %c0_31 = arith.constant 0 : index
    %56 = vector.load %arg1[%c5_29, %c0_30, %c0_31] : memref<36x8x49xf32, #tpu.memory_space<vmem>>, vector<1x8x49xf32>
    %57 = vector.shape_cast %56 : vector<1x8x49xf32> to vector<8x49xf32>
    %58 = vector.shape_cast %55 : vector<2x49xf32> to vector<2x1x49xf32>
    %59 = vector.shape_cast %57 : vector<8x49xf32> to vector<1x8x49xf32>
    %60 = vector.broadcast %58 : vector<2x1x49xf32> to vector<2x8x49xf32>
    %61 = vector.broadcast %59 : vector<1x8x49xf32> to vector<2x8x49xf32>
    %62 = arith.mulf %60, %61 : vector<2x8x49xf32>
    %63 = arith.addf %53, %62 : vector<2x8x49xf32>
    %c0_32 = arith.constant 0 : index
    %c6 = arith.constant 6 : index
    %c0_33 = arith.constant 0 : index
    %64 = vector.load %arg0[%c0_32, %c6, %c0_33] : memref<2x36x49xf32, #tpu.memory_space<vmem>>, vector<2x1x49xf32>
    %65 = vector.shape_cast %64 : vector<2x1x49xf32> to vector<2x49xf32>
    %c6_34 = arith.constant 6 : index
    %c0_35 = arith.constant 0 : index
    %c0_36 = arith.constant 0 : index
    %66 = vector.load %arg1[%c6_34, %c0_35, %c0_36] : memref<36x8x49xf32, #tpu.memory_space<vmem>>, vector<1x8x49xf32>
    %67 = vector.shape_cast %66 : vector<1x8x49xf32> to vector<8x49xf32>
    %68 = vector.shape_cast %65 : vector<2x49xf32> to vector<2x1x49xf32>
    %69 = vector.shape_cast %67 : vector<8x49xf32> to vector<1x8x49xf32>
    %70 = vector.broadcast %68 : vector<2x1x49xf32> to vector<2x8x49xf32>
    %71 = vector.broadcast %69 : vector<1x8x49xf32> to vector<2x8x49xf32>
    %72 = arith.mulf %70, %71 : vector<2x8x49xf32>
    %73 = arith.addf %63, %72 : vector<2x8x49xf32>
    %c0_37 = arith.constant 0 : index
    %c7 = arith.constant 7 : index
    %c0_38 = arith.constant 0 : index
    %74 = vector.load %arg0[%c0_37, %c7, %c0_38] : memref<2x36x49xf32, #tpu.memory_space<vmem>>, vector<2x1x49xf32>
    %75 = vector.shape_cast %74 : vector<2x1x49xf32> to vector<2x49xf32>
    %c7_39 = arith.constant 7 : index
    %c0_40 = arith.constant 0 : index
    %c0_41 = arith.constant 0 : index
    %76 = vector.load %arg1[%c7_39, %c0_40, %c0_41] : memref<36x8x49xf32, #tpu.memory_space<vmem>>, vector<1x8x49xf32>
    %77 = vector.shape_cast %76 : vector<1x8x49xf32> to vector<8x49xf32>
    %78 = vector.shape_cast %75 : vector<2x49xf32> to vector<2x1x49xf32>
    %79 = vector.shape_cast %77 : vector<8x49xf32> to vector<1x8x49xf32>
    %80 = vector.broadcast %78 : vector<2x1x49xf32> to vector<2x8x49xf32>
    %81 = vector.broadcast %79 : vector<1x8x49xf32> to vector<2x8x49xf32>
    %82 = arith.mulf %80, %81 : vector<2x8x49xf32>
    %83 = arith.addf %73, %82 : vector<2x8x49xf32>
    %c0_42 = arith.constant 0 : index
    %c8 = arith.constant 8 : index
    %c0_43 = arith.constant 0 : index
    %84 = vector.load %arg0[%c0_42, %c8, %c0_43] : memref<2x36x49xf32, #tpu.memory_space<vmem>>, vector<2x1x49xf32>
    %85 = vector.shape_cast %84 : vector<2x1x49xf32> to vector<2x49xf32>
    %c8_44 = arith.constant 8 : index
    %c0_45 = arith.constant 0 : index
    %c0_46 = arith.constant 0 : index
    %86 = vector.load %arg1[%c8_44, %c0_45, %c0_46] : memref<36x8x49xf32, #tpu.memory_space<vmem>>, vector<1x8x49xf32>
    %87 = vector.shape_cast %86 : vector<1x8x49xf32> to vector<8x49xf32>
    %88 = vector.shape_cast %85 : vector<2x49xf32> to vector<2x1x49xf32>
    %89 = vector.shape_cast %87 : vector<8x49xf32> to vector<1x8x49xf32>
    %90 = vector.broadcast %88 : vector<2x1x49xf32> to vector<2x8x49xf32>
    %91 = vector.broadcast %89 : vector<1x8x49xf32> to vector<2x8x49xf32>
    %92 = arith.mulf %90, %91 : vector<2x8x49xf32>
    %93 = arith.addf %83, %92 : vector<2x8x49xf32>
    %c0_47 = arith.constant 0 : index
    %c9 = arith.constant 9 : index
    %c0_48 = arith.constant 0 : index
    %94 = vector.load %arg0[%c0_47, %c9, %c0_48] : memref<2x36x49xf32, #tpu.memory_space<vmem>>, vector<2x1x49xf32>
    %95 = vector.shape_cast %94 : vector<2x1x49xf32> to vector<2x49xf32>
    %c9_49 = arith.constant 9 : index
    %c0_50 = arith.constant 0 : index
    %c0_51 = arith.constant 0 : index
    %96 = vector.load %arg1[%c9_49, %c0_50, %c0_51] : memref<36x8x49xf32, #tpu.memory_space<vmem>>, vector<1x8x49xf32>
    %97 = vector.shape_cast %96 : vector<1x8x49xf32> to vector<8x49xf32>
    %98 = vector.shape_cast %95 : vector<2x49xf32> to vector<2x1x49xf32>
    %99 = vector.shape_cast %97 : vector<8x49xf32> to vector<1x8x49xf32>
    %100 = vector.broadcast %98 : vector<2x1x49xf32> to vector<2x8x49xf32>
    %101 = vector.broadcast %99 : vector<1x8x49xf32> to vector<2x8x49xf32>
    %102 = arith.mulf %100, %101 : vector<2x8x49xf32>
    %103 = arith.addf %93, %102 : vector<2x8x49xf32>
    %c0_52 = arith.constant 0 : index
    %c10 = arith.constant 10 : index
    %c0_53 = arith.constant 0 : index
    %104 = vector.load %arg0[%c0_52, %c10, %c0_53] : memref<2x36x49xf32, #tpu.memory_space<vmem>>, vector<2x1x49xf32>
    %105 = vector.shape_cast %104 : vector<2x1x49xf32> to vector<2x49xf32>
    %c10_54 = arith.constant 10 : index
    %c0_55 = arith.constant 0 : index
    %c0_56 = arith.constant 0 : index
    %106 = vector.load %arg1[%c10_54, %c0_55, %c0_56] : memref<36x8x49xf32, #tpu.memory_space<vmem>>, vector<1x8x49xf32>
    %107 = vector.shape_cast %106 : vector<1x8x49xf32> to vector<8x49xf32>
    %108 = vector.shape_cast %105 : vector<2x49xf32> to vector<2x1x49xf32>
    %109 = vector.shape_cast %107 : vector<8x49xf32> to vector<1x8x49xf32>
    %110 = vector.broadcast %108 : vector<2x1x49xf32> to vector<2x8x49xf32>
    %111 = vector.broadcast %109 : vector<1x8x49xf32> to vector<2x8x49xf32>
    %112 = arith.mulf %110, %111 : vector<2x8x49xf32>
    %113 = arith.addf %103, %112 : vector<2x8x49xf32>
    %c0_57 = arith.constant 0 : index
    %c11 = arith.constant 11 : index
    %c0_58 = arith.constant 0 : index
    %114 = vector.load %arg0[%c0_57, %c11, %c0_58] : memref<2x36x49xf32, #tpu.memory_space<vmem>>, vector<2x1x49xf32>
    %115 = vector.shape_cast %114 : vector<2x1x49xf32> to vector<2x49xf32>
    %c11_59 = arith.constant 11 : index
    %c0_60 = arith.constant 0 : index
    %c0_61 = arith.constant 0 : index
    %116 = vector.load %arg1[%c11_59, %c0_60, %c0_61] : memref<36x8x49xf32, #tpu.memory_space<vmem>>, vector<1x8x49xf32>
    %117 = vector.shape_cast %116 : vector<1x8x49xf32> to vector<8x49xf32>
    %118 = vector.shape_cast %115 : vector<2x49xf32> to vector<2x1x49xf32>
    %119 = vector.shape_cast %117 : vector<8x49xf32> to vector<1x8x49xf32>
    %120 = vector.broadcast %118 : vector<2x1x49xf32> to vector<2x8x49xf32>
    %121 = vector.broadcast %119 : vector<1x8x49xf32> to vector<2x8x49xf32>
    %122 = arith.mulf %120, %121 : vector<2x8x49xf32>
    %123 = arith.addf %113, %122 : vector<2x8x49xf32>
    %c0_62 = arith.constant 0 : index
    %c12 = arith.constant 12 : index
    %c0_63 = arith.constant 0 : index
    %124 = vector.load %arg0[%c0_62, %c12, %c0_63] : memref<2x36x49xf32, #tpu.memory_space<vmem>>, vector<2x1x49xf32>
    %125 = vector.shape_cast %124 : vector<2x1x49xf32> to vector<2x49xf32>
    %c12_64 = arith.constant 12 : index
    %c0_65 = arith.constant 0 : index
    %c0_66 = arith.constant 0 : index
    %126 = vector.load %arg1[%c12_64, %c0_65, %c0_66] : memref<36x8x49xf32, #tpu.memory_space<vmem>>, vector<1x8x49xf32>
    %127 = vector.shape_cast %126 : vector<1x8x49xf32> to vector<8x49xf32>
    %128 = vector.shape_cast %125 : vector<2x49xf32> to vector<2x1x49xf32>
    %129 = vector.shape_cast %127 : vector<8x49xf32> to vector<1x8x49xf32>
    %130 = vector.broadcast %128 : vector<2x1x49xf32> to vector<2x8x49xf32>
    %131 = vector.broadcast %129 : vector<1x8x49xf32> to vector<2x8x49xf32>
    %132 = arith.mulf %130, %131 : vector<2x8x49xf32>
    %133 = arith.addf %123, %132 : vector<2x8x49xf32>
    %c0_67 = arith.constant 0 : index
    %c13 = arith.constant 13 : index
    %c0_68 = arith.constant 0 : index
    %134 = vector.load %arg0[%c0_67, %c13, %c0_68] : memref<2x36x49xf32, #tpu.memory_space<vmem>>, vector<2x1x49xf32>
    %135 = vector.shape_cast %134 : vector<2x1x49xf32> to vector<2x49xf32>
    %c13_69 = arith.constant 13 : index
    %c0_70 = arith.constant 0 : index
    %c0_71 = arith.constant 0 : index
    %136 = vector.load %arg1[%c13_69, %c0_70, %c0_71] : memref<36x8x49xf32, #tpu.memory_space<vmem>>, vector<1x8x49xf32>
    %137 = vector.shape_cast %136 : vector<1x8x49xf32> to vector<8x49xf32>
    %138 = vector.shape_cast %135 : vector<2x49xf32> to vector<2x1x49xf32>
    %139 = vector.shape_cast %137 : vector<8x49xf32> to vector<1x8x49xf32>
    %140 = vector.broadcast %138 : vector<2x1x49xf32> to vector<2x8x49xf32>
    %141 = vector.broadcast %139 : vector<1x8x49xf32> to vector<2x8x49xf32>
    %142 = arith.mulf %140, %141 : vector<2x8x49xf32>
    %143 = arith.addf %133, %142 : vector<2x8x49xf32>
    %c0_72 = arith.constant 0 : index
    %c14 = arith.constant 14 : index
    %c0_73 = arith.constant 0 : index
    %144 = vector.load %arg0[%c0_72, %c14, %c0_73] : memref<2x36x49xf32, #tpu.memory_space<vmem>>, vector<2x1x49xf32>
    %145 = vector.shape_cast %144 : vector<2x1x49xf32> to vector<2x49xf32>
    %c14_74 = arith.constant 14 : index
    %c0_75 = arith.constant 0 : index
    %c0_76 = arith.constant 0 : index
    %146 = vector.load %arg1[%c14_74, %c0_75, %c0_76] : memref<36x8x49xf32, #tpu.memory_space<vmem>>, vector<1x8x49xf32>
    %147 = vector.shape_cast %146 : vector<1x8x49xf32> to vector<8x49xf32>
    %148 = vector.shape_cast %145 : vector<2x49xf32> to vector<2x1x49xf32>
    %149 = vector.shape_cast %147 : vector<8x49xf32> to vector<1x8x49xf32>
    %150 = vector.broadcast %148 : vector<2x1x49xf32> to vector<2x8x49xf32>
    %151 = vector.broadcast %149 : vector<1x8x49xf32> to vector<2x8x49xf32>
    %152 = arith.mulf %150, %151 : vector<2x8x49xf32>
    %153 = arith.addf %143, %152 : vector<2x8x49xf32>
    %c0_77 = arith.constant 0 : index
    %c15 = arith.constant 15 : index
    %c0_78 = arith.constant 0 : index
    %154 = vector.load %arg0[%c0_77, %c15, %c0_78] : memref<2x36x49xf32, #tpu.memory_space<vmem>>, vector<2x1x49xf32>
    %155 = vector.shape_cast %154 : vector<2x1x49xf32> to vector<2x49xf32>
    %c15_79 = arith.constant 15 : index
    %c0_80 = arith.constant 0 : index
    %c0_81 = arith.constant 0 : index
    %156 = vector.load %arg1[%c15_79, %c0_80, %c0_81] : memref<36x8x49xf32, #tpu.memory_space<vmem>>, vector<1x8x49xf32>
    %157 = vector.shape_cast %156 : vector<1x8x49xf32> to vector<8x49xf32>
    %158 = vector.shape_cast %155 : vector<2x49xf32> to vector<2x1x49xf32>
    %159 = vector.shape_cast %157 : vector<8x49xf32> to vector<1x8x49xf32>
    %160 = vector.broadcast %158 : vector<2x1x49xf32> to vector<2x8x49xf32>
    %161 = vector.broadcast %159 : vector<1x8x49xf32> to vector<2x8x49xf32>
    %162 = arith.mulf %160, %161 : vector<2x8x49xf32>
    %163 = arith.addf %153, %162 : vector<2x8x49xf32>
    %c0_82 = arith.constant 0 : index
    %c16 = arith.constant 16 : index
    %c0_83 = arith.constant 0 : index
    %164 = vector.load %arg0[%c0_82, %c16, %c0_83] : memref<2x36x49xf32, #tpu.memory_space<vmem>>, vector<2x1x49xf32>
    %165 = vector.shape_cast %164 : vector<2x1x49xf32> to vector<2x49xf32>
    %c16_84 = arith.constant 16 : index
    %c0_85 = arith.constant 0 : index
    %c0_86 = arith.constant 0 : index
    %166 = vector.load %arg1[%c16_84, %c0_85, %c0_86] : memref<36x8x49xf32, #tpu.memory_space<vmem>>, vector<1x8x49xf32>
    %167 = vector.shape_cast %166 : vector<1x8x49xf32> to vector<8x49xf32>
    %168 = vector.shape_cast %165 : vector<2x49xf32> to vector<2x1x49xf32>
    %169 = vector.shape_cast %167 : vector<8x49xf32> to vector<1x8x49xf32>
    %170 = vector.broadcast %168 : vector<2x1x49xf32> to vector<2x8x49xf32>
    %171 = vector.broadcast %169 : vector<1x8x49xf32> to vector<2x8x49xf32>
    %172 = arith.mulf %170, %171 : vector<2x8x49xf32>
    %173 = arith.addf %163, %172 : vector<2x8x49xf32>
    %c0_87 = arith.constant 0 : index
    %c17 = arith.constant 17 : index
    %c0_88 = arith.constant 0 : index
    %174 = vector.load %arg0[%c0_87, %c17, %c0_88] : memref<2x36x49xf32, #tpu.memory_space<vmem>>, vector<2x1x49xf32>
    %175 = vector.shape_cast %174 : vector<2x1x49xf32> to vector<2x49xf32>
    %c17_89 = arith.constant 17 : index
    %c0_90 = arith.constant 0 : index
    %c0_91 = arith.constant 0 : index
    %176 = vector.load %arg1[%c17_89, %c0_90, %c0_91] : memref<36x8x49xf32, #tpu.memory_space<vmem>>, vector<1x8x49xf32>
    %177 = vector.shape_cast %176 : vector<1x8x49xf32> to vector<8x49xf32>
    %178 = vector.shape_cast %175 : vector<2x49xf32> to vector<2x1x49xf32>
    %179 = vector.shape_cast %177 : vector<8x49xf32> to vector<1x8x49xf32>
    %180 = vector.broadcast %178 : vector<2x1x49xf32> to vector<2x8x49xf32>
    %181 = vector.broadcast %179 : vector<1x8x49xf32> to vector<2x8x49xf32>
    %182 = arith.mulf %180, %181 : vector<2x8x49xf32>
    %183 = arith.addf %173, %182 : vector<2x8x49xf32>
    %c0_92 = arith.constant 0 : index
    %c18 = arith.constant 18 : index
    %c0_93 = arith.constant 0 : index
    %184 = vector.load %arg0[%c0_92, %c18, %c0_93] : memref<2x36x49xf32, #tpu.memory_space<vmem>>, vector<2x1x49xf32>
    %185 = vector.shape_cast %184 : vector<2x1x49xf32> to vector<2x49xf32>
    %c18_94 = arith.constant 18 : index
    %c0_95 = arith.constant 0 : index
    %c0_96 = arith.constant 0 : index
    %186 = vector.load %arg1[%c18_94, %c0_95, %c0_96] : memref<36x8x49xf32, #tpu.memory_space<vmem>>, vector<1x8x49xf32>
    %187 = vector.shape_cast %186 : vector<1x8x49xf32> to vector<8x49xf32>
    %188 = vector.shape_cast %185 : vector<2x49xf32> to vector<2x1x49xf32>
    %189 = vector.shape_cast %187 : vector<8x49xf32> to vector<1x8x49xf32>
    %190 = vector.broadcast %188 : vector<2x1x49xf32> to vector<2x8x49xf32>
    %191 = vector.broadcast %189 : vector<1x8x49xf32> to vector<2x8x49xf32>
    %192 = arith.mulf %190, %191 : vector<2x8x49xf32>
    %193 = arith.addf %183, %192 : vector<2x8x49xf32>
    %c0_97 = arith.constant 0 : index
    %c19 = arith.constant 19 : index
    %c0_98 = arith.constant 0 : index
    %194 = vector.load %arg0[%c0_97, %c19, %c0_98] : memref<2x36x49xf32, #tpu.memory_space<vmem>>, vector<2x1x49xf32>
    %195 = vector.shape_cast %194 : vector<2x1x49xf32> to vector<2x49xf32>
    %c19_99 = arith.constant 19 : index
    %c0_100 = arith.constant 0 : index
    %c0_101 = arith.constant 0 : index
    %196 = vector.load %arg1[%c19_99, %c0_100, %c0_101] : memref<36x8x49xf32, #tpu.memory_space<vmem>>, vector<1x8x49xf32>
    %197 = vector.shape_cast %196 : vector<1x8x49xf32> to vector<8x49xf32>
    %198 = vector.shape_cast %195 : vector<2x49xf32> to vector<2x1x49xf32>
    %199 = vector.shape_cast %197 : vector<8x49xf32> to vector<1x8x49xf32>
    %200 = vector.broadcast %198 : vector<2x1x49xf32> to vector<2x8x49xf32>
    %201 = vector.broadcast %199 : vector<1x8x49xf32> to vector<2x8x49xf32>
    %202 = arith.mulf %200, %201 : vector<2x8x49xf32>
    %203 = arith.addf %193, %202 : vector<2x8x49xf32>
    %c0_102 = arith.constant 0 : index
    %c20 = arith.constant 20 : index
    %c0_103 = arith.constant 0 : index
    %204 = vector.load %arg0[%c0_102, %c20, %c0_103] : memref<2x36x49xf32, #tpu.memory_space<vmem>>, vector<2x1x49xf32>
    %205 = vector.shape_cast %204 : vector<2x1x49xf32> to vector<2x49xf32>
    %c20_104 = arith.constant 20 : index
    %c0_105 = arith.constant 0 : index
    %c0_106 = arith.constant 0 : index
    %206 = vector.load %arg1[%c20_104, %c0_105, %c0_106] : memref<36x8x49xf32, #tpu.memory_space<vmem>>, vector<1x8x49xf32>
    %207 = vector.shape_cast %206 : vector<1x8x49xf32> to vector<8x49xf32>
    %208 = vector.shape_cast %205 : vector<2x49xf32> to vector<2x1x49xf32>
    %209 = vector.shape_cast %207 : vector<8x49xf32> to vector<1x8x49xf32>
    %210 = vector.broadcast %208 : vector<2x1x49xf32> to vector<2x8x49xf32>
    %211 = vector.broadcast %209 : vector<1x8x49xf32> to vector<2x8x49xf32>
    %212 = arith.mulf %210, %211 : vector<2x8x49xf32>
    %213 = arith.addf %203, %212 : vector<2x8x49xf32>
    %c0_107 = arith.constant 0 : index
    %c21 = arith.constant 21 : index
    %c0_108 = arith.constant 0 : index
    %214 = vector.load %arg0[%c0_107, %c21, %c0_108] : memref<2x36x49xf32, #tpu.memory_space<vmem>>, vector<2x1x49xf32>
    %215 = vector.shape_cast %214 : vector<2x1x49xf32> to vector<2x49xf32>
    %c21_109 = arith.constant 21 : index
    %c0_110 = arith.constant 0 : index
    %c0_111 = arith.constant 0 : index
    %216 = vector.load %arg1[%c21_109, %c0_110, %c0_111] : memref<36x8x49xf32, #tpu.memory_space<vmem>>, vector<1x8x49xf32>
    %217 = vector.shape_cast %216 : vector<1x8x49xf32> to vector<8x49xf32>
    %218 = vector.shape_cast %215 : vector<2x49xf32> to vector<2x1x49xf32>
    %219 = vector.shape_cast %217 : vector<8x49xf32> to vector<1x8x49xf32>
    %220 = vector.broadcast %218 : vector<2x1x49xf32> to vector<2x8x49xf32>
    %221 = vector.broadcast %219 : vector<1x8x49xf32> to vector<2x8x49xf32>
    %222 = arith.mulf %220, %221 : vector<2x8x49xf32>
    %223 = arith.addf %213, %222 : vector<2x8x49xf32>
    %c0_112 = arith.constant 0 : index
    %c22 = arith.constant 22 : index
    %c0_113 = arith.constant 0 : index
    %224 = vector.load %arg0[%c0_112, %c22, %c0_113] : memref<2x36x49xf32, #tpu.memory_space<vmem>>, vector<2x1x49xf32>
    %225 = vector.shape_cast %224 : vector<2x1x49xf32> to vector<2x49xf32>
    %c22_114 = arith.constant 22 : index
    %c0_115 = arith.constant 0 : index
    %c0_116 = arith.constant 0 : index
    %226 = vector.load %arg1[%c22_114, %c0_115, %c0_116] : memref<36x8x49xf32, #tpu.memory_space<vmem>>, vector<1x8x49xf32>
    %227 = vector.shape_cast %226 : vector<1x8x49xf32> to vector<8x49xf32>
    %228 = vector.shape_cast %225 : vector<2x49xf32> to vector<2x1x49xf32>
    %229 = vector.shape_cast %227 : vector<8x49xf32> to vector<1x8x49xf32>
    %230 = vector.broadcast %228 : vector<2x1x49xf32> to vector<2x8x49xf32>
    %231 = vector.broadcast %229 : vector<1x8x49xf32> to vector<2x8x49xf32>
    %232 = arith.mulf %230, %231 : vector<2x8x49xf32>
    %233 = arith.addf %223, %232 : vector<2x8x49xf32>
    %c0_117 = arith.constant 0 : index
    %c23 = arith.constant 23 : index
    %c0_118 = arith.constant 0 : index
    %234 = vector.load %arg0[%c0_117, %c23, %c0_118] : memref<2x36x49xf32, #tpu.memory_space<vmem>>, vector<2x1x49xf32>
    %235 = vector.shape_cast %234 : vector<2x1x49xf32> to vector<2x49xf32>
    %c23_119 = arith.constant 23 : index
    %c0_120 = arith.constant 0 : index
    %c0_121 = arith.constant 0 : index
    %236 = vector.load %arg1[%c23_119, %c0_120, %c0_121] : memref<36x8x49xf32, #tpu.memory_space<vmem>>, vector<1x8x49xf32>
    %237 = vector.shape_cast %236 : vector<1x8x49xf32> to vector<8x49xf32>
    %238 = vector.shape_cast %235 : vector<2x49xf32> to vector<2x1x49xf32>
    %239 = vector.shape_cast %237 : vector<8x49xf32> to vector<1x8x49xf32>
    %240 = vector.broadcast %238 : vector<2x1x49xf32> to vector<2x8x49xf32>
    %241 = vector.broadcast %239 : vector<1x8x49xf32> to vector<2x8x49xf32>
    %242 = arith.mulf %240, %241 : vector<2x8x49xf32>
    %243 = arith.addf %233, %242 : vector<2x8x49xf32>
    %c0_122 = arith.constant 0 : index
    %c24 = arith.constant 24 : index
    %c0_123 = arith.constant 0 : index
    %244 = vector.load %arg0[%c0_122, %c24, %c0_123] : memref<2x36x49xf32, #tpu.memory_space<vmem>>, vector<2x1x49xf32>
    %245 = vector.shape_cast %244 : vector<2x1x49xf32> to vector<2x49xf32>
    %c24_124 = arith.constant 24 : index
    %c0_125 = arith.constant 0 : index
    %c0_126 = arith.constant 0 : index
    %246 = vector.load %arg1[%c24_124, %c0_125, %c0_126] : memref<36x8x49xf32, #tpu.memory_space<vmem>>, vector<1x8x49xf32>
    %247 = vector.shape_cast %246 : vector<1x8x49xf32> to vector<8x49xf32>
    %248 = vector.shape_cast %245 : vector<2x49xf32> to vector<2x1x49xf32>
    %249 = vector.shape_cast %247 : vector<8x49xf32> to vector<1x8x49xf32>
    %250 = vector.broadcast %248 : vector<2x1x49xf32> to vector<2x8x49xf32>
    %251 = vector.broadcast %249 : vector<1x8x49xf32> to vector<2x8x49xf32>
    %252 = arith.mulf %250, %251 : vector<2x8x49xf32>
    %253 = arith.addf %243, %252 : vector<2x8x49xf32>
    %c0_127 = arith.constant 0 : index
    %c25 = arith.constant 25 : index
    %c0_128 = arith.constant 0 : index
    %254 = vector.load %arg0[%c0_127, %c25, %c0_128] : memref<2x36x49xf32, #tpu.memory_space<vmem>>, vector<2x1x49xf32>
    %255 = vector.shape_cast %254 : vector<2x1x49xf32> to vector<2x49xf32>
    %c25_129 = arith.constant 25 : index
    %c0_130 = arith.constant 0 : index
    %c0_131 = arith.constant 0 : index
    %256 = vector.load %arg1[%c25_129, %c0_130, %c0_131] : memref<36x8x49xf32, #tpu.memory_space<vmem>>, vector<1x8x49xf32>
    %257 = vector.shape_cast %256 : vector<1x8x49xf32> to vector<8x49xf32>
    %258 = vector.shape_cast %255 : vector<2x49xf32> to vector<2x1x49xf32>
    %259 = vector.shape_cast %257 : vector<8x49xf32> to vector<1x8x49xf32>
    %260 = vector.broadcast %258 : vector<2x1x49xf32> to vector<2x8x49xf32>
    %261 = vector.broadcast %259 : vector<1x8x49xf32> to vector<2x8x49xf32>
    %262 = arith.mulf %260, %261 : vector<2x8x49xf32>
    %263 = arith.addf %253, %262 : vector<2x8x49xf32>
    %c0_132 = arith.constant 0 : index
    %c26 = arith.constant 26 : index
    %c0_133 = arith.constant 0 : index
    %264 = vector.load %arg0[%c0_132, %c26, %c0_133] : memref<2x36x49xf32, #tpu.memory_space<vmem>>, vector<2x1x49xf32>
    %265 = vector.shape_cast %264 : vector<2x1x49xf32> to vector<2x49xf32>
    %c26_134 = arith.constant 26 : index
    %c0_135 = arith.constant 0 : index
    %c0_136 = arith.constant 0 : index
    %266 = vector.load %arg1[%c26_134, %c0_135, %c0_136] : memref<36x8x49xf32, #tpu.memory_space<vmem>>, vector<1x8x49xf32>
    %267 = vector.shape_cast %266 : vector<1x8x49xf32> to vector<8x49xf32>
    %268 = vector.shape_cast %265 : vector<2x49xf32> to vector<2x1x49xf32>
    %269 = vector.shape_cast %267 : vector<8x49xf32> to vector<1x8x49xf32>
    %270 = vector.broadcast %268 : vector<2x1x49xf32> to vector<2x8x49xf32>
    %271 = vector.broadcast %269 : vector<1x8x49xf32> to vector<2x8x49xf32>
    %272 = arith.mulf %270, %271 : vector<2x8x49xf32>
    %273 = arith.addf %263, %272 : vector<2x8x49xf32>
    %c0_137 = arith.constant 0 : index
    %c27 = arith.constant 27 : index
    %c0_138 = arith.constant 0 : index
    %274 = vector.load %arg0[%c0_137, %c27, %c0_138] : memref<2x36x49xf32, #tpu.memory_space<vmem>>, vector<2x1x49xf32>
    %275 = vector.shape_cast %274 : vector<2x1x49xf32> to vector<2x49xf32>
    %c27_139 = arith.constant 27 : index
    %c0_140 = arith.constant 0 : index
    %c0_141 = arith.constant 0 : index
    %276 = vector.load %arg1[%c27_139, %c0_140, %c0_141] : memref<36x8x49xf32, #tpu.memory_space<vmem>>, vector<1x8x49xf32>
    %277 = vector.shape_cast %276 : vector<1x8x49xf32> to vector<8x49xf32>
    %278 = vector.shape_cast %275 : vector<2x49xf32> to vector<2x1x49xf32>
    %279 = vector.shape_cast %277 : vector<8x49xf32> to vector<1x8x49xf32>
    %280 = vector.broadcast %278 : vector<2x1x49xf32> to vector<2x8x49xf32>
    %281 = vector.broadcast %279 : vector<1x8x49xf32> to vector<2x8x49xf32>
    %282 = arith.mulf %280, %281 : vector<2x8x49xf32>
    %283 = arith.addf %273, %282 : vector<2x8x49xf32>
    %c0_142 = arith.constant 0 : index
    %c28 = arith.constant 28 : index
    %c0_143 = arith.constant 0 : index
    %284 = vector.load %arg0[%c0_142, %c28, %c0_143] : memref<2x36x49xf32, #tpu.memory_space<vmem>>, vector<2x1x49xf32>
    %285 = vector.shape_cast %284 : vector<2x1x49xf32> to vector<2x49xf32>
    %c28_144 = arith.constant 28 : index
    %c0_145 = arith.constant 0 : index
    %c0_146 = arith.constant 0 : index
    %286 = vector.load %arg1[%c28_144, %c0_145, %c0_146] : memref<36x8x49xf32, #tpu.memory_space<vmem>>, vector<1x8x49xf32>
    %287 = vector.shape_cast %286 : vector<1x8x49xf32> to vector<8x49xf32>
    %288 = vector.shape_cast %285 : vector<2x49xf32> to vector<2x1x49xf32>
    %289 = vector.shape_cast %287 : vector<8x49xf32> to vector<1x8x49xf32>
    %290 = vector.broadcast %288 : vector<2x1x49xf32> to vector<2x8x49xf32>
    %291 = vector.broadcast %289 : vector<1x8x49xf32> to vector<2x8x49xf32>
    %292 = arith.mulf %290, %291 : vector<2x8x49xf32>
    %293 = arith.addf %283, %292 : vector<2x8x49xf32>
    %c0_147 = arith.constant 0 : index
    %c29 = arith.constant 29 : index
    %c0_148 = arith.constant 0 : index
    %294 = vector.load %arg0[%c0_147, %c29, %c0_148] : memref<2x36x49xf32, #tpu.memory_space<vmem>>, vector<2x1x49xf32>
    %295 = vector.shape_cast %294 : vector<2x1x49xf32> to vector<2x49xf32>
    %c29_149 = arith.constant 29 : index
    %c0_150 = arith.constant 0 : index
    %c0_151 = arith.constant 0 : index
    %296 = vector.load %arg1[%c29_149, %c0_150, %c0_151] : memref<36x8x49xf32, #tpu.memory_space<vmem>>, vector<1x8x49xf32>
    %297 = vector.shape_cast %296 : vector<1x8x49xf32> to vector<8x49xf32>
    %298 = vector.shape_cast %295 : vector<2x49xf32> to vector<2x1x49xf32>
    %299 = vector.shape_cast %297 : vector<8x49xf32> to vector<1x8x49xf32>
    %300 = vector.broadcast %298 : vector<2x1x49xf32> to vector<2x8x49xf32>
    %301 = vector.broadcast %299 : vector<1x8x49xf32> to vector<2x8x49xf32>
    %302 = arith.mulf %300, %301 : vector<2x8x49xf32>
    %303 = arith.addf %293, %302 : vector<2x8x49xf32>
    %c0_152 = arith.constant 0 : index
    %c30 = arith.constant 30 : index
    %c0_153 = arith.constant 0 : index
    %304 = vector.load %arg0[%c0_152, %c30, %c0_153] : memref<2x36x49xf32, #tpu.memory_space<vmem>>, vector<2x1x49xf32>
    %305 = vector.shape_cast %304 : vector<2x1x49xf32> to vector<2x49xf32>
    %c30_154 = arith.constant 30 : index
    %c0_155 = arith.constant 0 : index
    %c0_156 = arith.constant 0 : index
    %306 = vector.load %arg1[%c30_154, %c0_155, %c0_156] : memref<36x8x49xf32, #tpu.memory_space<vmem>>, vector<1x8x49xf32>
    %307 = vector.shape_cast %306 : vector<1x8x49xf32> to vector<8x49xf32>
    %308 = vector.shape_cast %305 : vector<2x49xf32> to vector<2x1x49xf32>
    %309 = vector.shape_cast %307 : vector<8x49xf32> to vector<1x8x49xf32>
    %310 = vector.broadcast %308 : vector<2x1x49xf32> to vector<2x8x49xf32>
    %311 = vector.broadcast %309 : vector<1x8x49xf32> to vector<2x8x49xf32>
    %312 = arith.mulf %310, %311 : vector<2x8x49xf32>
    %313 = arith.addf %303, %312 : vector<2x8x49xf32>
    %c0_157 = arith.constant 0 : index
    %c31 = arith.constant 31 : index
    %c0_158 = arith.constant 0 : index
    %314 = vector.load %arg0[%c0_157, %c31, %c0_158] : memref<2x36x49xf32, #tpu.memory_space<vmem>>, vector<2x1x49xf32>
    %315 = vector.shape_cast %314 : vector<2x1x49xf32> to vector<2x49xf32>
    %c31_159 = arith.constant 31 : index
    %c0_160 = arith.constant 0 : index
    %c0_161 = arith.constant 0 : index
    %316 = vector.load %arg1[%c31_159, %c0_160, %c0_161] : memref<36x8x49xf32, #tpu.memory_space<vmem>>, vector<1x8x49xf32>
    %317 = vector.shape_cast %316 : vector<1x8x49xf32> to vector<8x49xf32>
    %318 = vector.shape_cast %315 : vector<2x49xf32> to vector<2x1x49xf32>
    %319 = vector.shape_cast %317 : vector<8x49xf32> to vector<1x8x49xf32>
    %320 = vector.broadcast %318 : vector<2x1x49xf32> to vector<2x8x49xf32>
    %321 = vector.broadcast %319 : vector<1x8x49xf32> to vector<2x8x49xf32>
    %322 = arith.mulf %320, %321 : vector<2x8x49xf32>
    %323 = arith.addf %313, %322 : vector<2x8x49xf32>
    %c0_162 = arith.constant 0 : index
    %c32 = arith.constant 32 : index
    %c0_163 = arith.constant 0 : index
    %324 = vector.load %arg0[%c0_162, %c32, %c0_163] : memref<2x36x49xf32, #tpu.memory_space<vmem>>, vector<2x1x49xf32>
    %325 = vector.shape_cast %324 : vector<2x1x49xf32> to vector<2x49xf32>
    %c32_164 = arith.constant 32 : index
    %c0_165 = arith.constant 0 : index
    %c0_166 = arith.constant 0 : index
    %326 = vector.load %arg1[%c32_164, %c0_165, %c0_166] : memref<36x8x49xf32, #tpu.memory_space<vmem>>, vector<1x8x49xf32>
    %327 = vector.shape_cast %326 : vector<1x8x49xf32> to vector<8x49xf32>
    %328 = vector.shape_cast %325 : vector<2x49xf32> to vector<2x1x49xf32>
    %329 = vector.shape_cast %327 : vector<8x49xf32> to vector<1x8x49xf32>
    %330 = vector.broadcast %328 : vector<2x1x49xf32> to vector<2x8x49xf32>
    %331 = vector.broadcast %329 : vector<1x8x49xf32> to vector<2x8x49xf32>
    %332 = arith.mulf %330, %331 : vector<2x8x49xf32>
    %333 = arith.addf %323, %332 : vector<2x8x49xf32>
    %c0_167 = arith.constant 0 : index
    %c33 = arith.constant 33 : index
    %c0_168 = arith.constant 0 : index
    %334 = vector.load %arg0[%c0_167, %c33, %c0_168] : memref<2x36x49xf32, #tpu.memory_space<vmem>>, vector<2x1x49xf32>
    %335 = vector.shape_cast %334 : vector<2x1x49xf32> to vector<2x49xf32>
    %c33_169 = arith.constant 33 : index
    %c0_170 = arith.constant 0 : index
    %c0_171 = arith.constant 0 : index
    %336 = vector.load %arg1[%c33_169, %c0_170, %c0_171] : memref<36x8x49xf32, #tpu.memory_space<vmem>>, vector<1x8x49xf32>
    %337 = vector.shape_cast %336 : vector<1x8x49xf32> to vector<8x49xf32>
    %338 = vector.shape_cast %335 : vector<2x49xf32> to vector<2x1x49xf32>
    %339 = vector.shape_cast %337 : vector<8x49xf32> to vector<1x8x49xf32>
    %340 = vector.broadcast %338 : vector<2x1x49xf32> to vector<2x8x49xf32>
    %341 = vector.broadcast %339 : vector<1x8x49xf32> to vector<2x8x49xf32>
    %342 = arith.mulf %340, %341 : vector<2x8x49xf32>
    %343 = arith.addf %333, %342 : vector<2x8x49xf32>
    %c0_172 = arith.constant 0 : index
    %c34 = arith.constant 34 : index
    %c0_173 = arith.constant 0 : index
    %344 = vector.load %arg0[%c0_172, %c34, %c0_173] : memref<2x36x49xf32, #tpu.memory_space<vmem>>, vector<2x1x49xf32>
    %345 = vector.shape_cast %344 : vector<2x1x49xf32> to vector<2x49xf32>
    %c34_174 = arith.constant 34 : index
    %c0_175 = arith.constant 0 : index
    %c0_176 = arith.constant 0 : index
    %346 = vector.load %arg1[%c34_174, %c0_175, %c0_176] : memref<36x8x49xf32, #tpu.memory_space<vmem>>, vector<1x8x49xf32>
    %347 = vector.shape_cast %346 : vector<1x8x49xf32> to vector<8x49xf32>
    %348 = vector.shape_cast %345 : vector<2x49xf32> to vector<2x1x49xf32>
    %349 = vector.shape_cast %347 : vector<8x49xf32> to vector<1x8x49xf32>
    %350 = vector.broadcast %348 : vector<2x1x49xf32> to vector<2x8x49xf32>
    %351 = vector.broadcast %349 : vector<1x8x49xf32> to vector<2x8x49xf32>
    %352 = arith.mulf %350, %351 : vector<2x8x49xf32>
    %353 = arith.addf %343, %352 : vector<2x8x49xf32>
    %c0_177 = arith.constant 0 : index
    %c35 = arith.constant 35 : index
    %c0_178 = arith.constant 0 : index
    %354 = vector.load %arg0[%c0_177, %c35, %c0_178] : memref<2x36x49xf32, #tpu.memory_space<vmem>>, vector<2x1x49xf32>
    %355 = vector.shape_cast %354 : vector<2x1x49xf32> to vector<2x49xf32>
    %c35_179 = arith.constant 35 : index
    %c0_180 = arith.constant 0 : index
    %c0_181 = arith.constant 0 : index
    %356 = vector.load %arg1[%c35_179, %c0_180, %c0_181] : memref<36x8x49xf32, #tpu.memory_space<vmem>>, vector<1x8x49xf32>
    %357 = vector.shape_cast %356 : vector<1x8x49xf32> to vector<8x49xf32>
    %358 = vector.shape_cast %355 : vector<2x49xf32> to vector<2x1x49xf32>
    %359 = vector.shape_cast %357 : vector<8x49xf32> to vector<1x8x49xf32>
    %360 = vector.broadcast %358 : vector<2x1x49xf32> to vector<2x8x49xf32>
    %361 = vector.broadcast %359 : vector<1x8x49xf32> to vector<2x8x49xf32>
    %362 = arith.mulf %360, %361 : vector<2x8x49xf32>
    %363 = arith.addf %353, %362 : vector<2x8x49xf32>
    %c0_182 = arith.constant 0 : index
    %c0_183 = arith.constant 0 : index
    %c0_184 = arith.constant 0 : index
    %364 = vector.load %arg3[%c0_182, %c0_183, %c0_184] : memref<2x8x49xf32, #tpu.memory_space<vmem>>, vector<2x8x49xf32>
    tpu.vector_store %arg3[%c0_182, %c0_183, %c0_184], %363 {strides = array<i32>} : memref<2x8x49xf32, #tpu.memory_space<vmem>>, vector<2x8x49xf32>,
    return
  }
}

</mosaic_0001>

<bundles_post_ra>
// kernel: locally_connected_forward.1
= control target key start
LH: loop header
LB: loop body
LE: loop exit
PB: predicated region body
PF: predicated region fallthrough
CT: control target
= control target key end

     0   :  { %vm590_vm0 = vcmask 400384   ;;  %s1081_s0 = inlined_call_operand.vmem [shape: f32[2,36,49], index: 0, kind: input, shape index: {}]   ;;  %s1082_s1 = inlined_call_operand.vmem [shape: f32[36,8,49], index: 1, kind: input, shape index: {}]   ;;  %s1083_s2 = inlined_call_operand.vmem [shape: f32[8,49], index: 2, kind: input, shape index: {}]   ;;  %s1084_s3 = inlined_call_operand.vmem [shape: f32[2,8,49], index: 3, kind: output, shape index: {}]  }
   0x1   :  { %v14_v0 = vld [vmem:[%s1083_s2] sm:$0xff]  ;;  %v598_v2 = vld [vmem:[%s1081_s0 + $0x28] ss:$0 sm:$0xff]  ;;  %v601_v5 = vld [vmem:[%s1081_s0 + $0x29] ss:$0 sm:$0xff] }
   0x2   :  { %v597_v1 = vld [vmem:[%s1081_s0] ss:$0 sm:$0xff]  ;;  %v600_v4 = vld [vmem:[%s1081_s0 + $0x1] ss:$0 sm:$0xff]  ;;  %v599_v8 = vld [vmem:[%s1082_s1 + $0x8] sm:$0xff] }
   0x3   :  { %v17_v3 = vld [vmem:[%s1082_s1] sm:$0xff]  ;;  %v604_v10 = vld [vmem:[%s1081_s0 + $0x2a] ss:$0 sm:$0xff]  ;;  %v42_v11 = vmul.f32 %v600_v4, %v599_v8  ;;  %v43_v12 = vmul.f32 %v601_v5, %v599_v8  ;;  %v602_v13 = vld [vmem:[%s1082_s1 + $0x10] sm:$0xff] }
   0x4   :  { %v26_v6 = vmul.f32 %v597_v1, %v17_v3  ;;  %v27_v7 = vmul.f32 %v598_v2, %v17_v3  ;;  %v603_v9 = vld [vmem:[%s1081_s0 + $0x2] ss:$0 sm:$0xff]  ;;  %v606_v14 = vld [vmem:[%s1081_s0 + $0x3] ss:$0 sm:$0xff]  ;;  %v607_v15 = vld [vmem:[%s1081_s0 + $0x2b] ss:$0 sm:$0xff]  ;;  %v59_v19 = vmul.f32 %v604_v10, %v602_v13 }
   0x5   :  { %v58_v18 = vmul.f32 %v603_v9, %v602_v13  ;;  %v605_v20 = vld [vmem:[%s1082_s1 + $0x18] sm:$0xff]  ;;  %v609_v21 = vld [vmem:[%s1081_s0 + $0x4] ss:$0 sm:$0xff]  ;;  %v610_v22 = vld [vmem:[%s1081_s0 + $0x2c] ss:$0 sm:$0xff] }
   0x6   :  { %v28_v16 = vadd.f32 %v26_v6, %v14_v0  ;;  %v29_v17 = vadd.f32 %v27_v7, %v14_v0  ;;  %v608_v23 = vld [vmem:[%s1082_s1 + $0x20] sm:$0xff]  ;;  %v74_v26 = vmul.f32 %v606_v14, %v605_v20  ;;  %v75_v27 = vmul.f32 %v607_v15, %v605_v20  ;;  %v613_v29 = vld [vmem:[%s1081_s0 + $0x2d] ss:$0 sm:$0xff]  ;;  %v616_v36 = vld [vmem:[%s1081_s0 + $0x2e] ss:$0 sm:$0xff] }
   0x7   :  { %v612_v28 = vld [vmem:[%s1081_s0 + $0x5] ss:$0 sm:$0xff]  ;;  %v611_v30 = vld [vmem:[%s1082_s1 + $0x28] sm:$0xff]  ;;  %v90_v33 = vmul.f32 %v609_v21, %v608_v23  ;;  %v91_v34 = vmul.f32 %v610_v22, %v608_v23  ;;  %v615_v35 = vld [vmem:[%s1081_s0 + $0x6] ss:$0 sm:$0xff] }
   0x8   :  { %v44_v24 = vadd.f32 %v42_v11, %v28_v16  ;;  %v45_v25 = vadd.f32 %v43_v12, %v29_v17  ;;  %v614_v37 = vld [vmem:[%s1082_s1 + $0x30] sm:$0xff]  ;;  %v106_v40 = vmul.f32 %v612_v28, %v611_v30  ;;  %v107_v41 = vmul.f32 %v613_v29, %v611_v30  ;;  %v618_v42 = vld [vmem:[%s1081_s0 + $0x7] ss:$0 sm:$0xff]  ;;  %v619_v43 = vld [vmem:[%s1081_s0 + $0x2f] ss:$0 sm:$0xff] }
   0x9   :  { %v617_v44 = vld [vmem:[%s1082_s1 + $0x38] sm:$0xff]  ;;  %v122_v47 = vmul.f32 %v615_v35, %v614_v37  ;;  %v123_v48 = vmul.f32 %v616_v36, %v614_v37  ;;  %v621_v49 = vld [vmem:[%s1081_s0 + $0x8] ss:$0 sm:$0xff]  ;;  %v622_v50 = vld [vmem:[%s1081_s0 + $0x30] ss:$0 sm:$0xff] }
   0xa   :  { %v60_v31 = vadd.f32 %v58_v18, %v44_v24  ;;  %v61_v32 = vadd.f32 %v59_v19, %v45_v25  ;;  %v620_v51 = vld [vmem:[%s1082_s1 + $0x40] sm:$0xff]  ;;  %v138_v54 = vmul.f32 %v618_v42, %v617_v44  ;;  %v139_v55 = vmul.f32 %v619_v43, %v617_v44  ;;  %v624_v56 = vld [vmem:[%s1081_s0 + $0x9] ss:$0 sm:$0xff]  ;;  %v625_v57 = vld [vmem:[%s1081_s0 + $0x31] ss:$0 sm:$0xff] }
   0xb   :  { %v623_v58 = vld [vmem:[%s1082_s1 + $0x48] sm:$0xff]  ;;  %v154_v61 = vmul.f32 %v621_v49, %v620_v51  ;;  %v155_v62 = vmul.f32 %v622_v50, %v620_v51  ;;  %v628_v0 = vld [vmem:[%s1081_s0 + $0x32] ss:$0 sm:$0xff]  ;;  %v631_v7 = vld [vmem:[%s1081_s0 + $0x33] ss:$0 sm:$0xff] }
   0xc   :  { %v76_v38 = vadd.f32 %v74_v26, %v60_v31  ;;  %v77_v39 = vadd.f32 %v75_v27, %v61_v32  ;;  %v627_v63 = vld [vmem:[%s1081_s0 + $0xa] ss:$0 sm:$0xff]  ;;  %v626_v1 = vld [vmem:[%s1082_s1 + $0x50] sm:$0xff]  ;;  %v170_v4 = vmul.f32 %v624_v56, %v623_v58  ;;  %v171_v5 = vmul.f32 %v625_v57, %v623_v58  ;;  %v630_v6 = vld [vmem:[%s1081_s0 + $0xb] ss:$0 sm:$0xff] }
   0xd   :  { %v629_v8 = vld [vmem:[%s1082_s1 + $0x58] sm:$0xff]  ;;  %v186_v11 = vmul.f32 %v627_v63, %v626_v1  ;;  %v187_v12 = vmul.f32 %v628_v0, %v626_v1  ;;  %v633_v13 = vld [vmem:[%s1081_s0 + $0xc] ss:$0 sm:$0xff]  ;;  %v634_v14 = vld [vmem:[%s1081_s0 + $0x34] ss:$0 sm:$0xff] }
   0xe   :  { %v92_v45 = vadd.f32 %v90_v33, %v76_v38  ;;  %v93_v46 = vadd.f32 %v91_v34, %v77_v39  ;;  %v632_v15 = vld [vmem:[%s1082_s1 + $0x60] sm:$0xff]  ;;  %v202_v18 = vmul.f32 %v630_v6, %v629_v8  ;;  %v203_v19 = vmul.f32 %v631_v7, %v629_v8  ;;  %v636_v20 = vld [vmem:[%s1081_s0 + $0xd] ss:$0 sm:$0xff]  ;;  %v637_v21 = vld [vmem:[%s1081_s0 + $0x35] ss:$0 sm:$0xff] }
   0xf   :  { %v635_v22 = vld [vmem:[%s1082_s1 + $0x68] sm:$0xff]  ;;  %v218_v25 = vmul.f32 %v633_v13, %v632_v15  ;;  %v219_v26 = vmul.f32 %v634_v14, %v632_v15  ;;  %v640_v28 = vld [vmem:[%s1081_s0 + $0x36] ss:$0 sm:$0xff]  ;;  %v643_v35 = vld [vmem:[%s1081_s0 + $0x37] ss:$0 sm:$0xff] }
  0x10   :  { %v108_v52 = vadd.f32 %v106_v40, %v92_v45  ;;  %v109_v53 = vadd.f32 %v107_v41, %v93_v46  ;;  %v639_v27 = vld [vmem:[%s1081_s0 + $0xe] ss:$0 sm:$0xff]  ;;  %v638_v29 = vld [vmem:[%s1082_s1 + $0x70] sm:$0xff]  ;;  %v234_v32 = vmul.f32 %v636_v20, %v635_v22  ;;  %v235_v33 = vmul.f32 %v637_v21, %v635_v22  ;;  %v642_v34 = vld [vmem:[%s1081_s0 + $0xf] ss:$0 sm:$0xff] }
  0x11   :  { %v641_v36 = vld [vmem:[%s1082_s1 + $0x78] sm:$0xff]  ;;  %v250_v39 = vmul.f32 %v639_v27, %v638_v29  ;;  %v251_v40 = vmul.f32 %v640_v28, %v638_v29  ;;  %v645_v41 = vld [vmem:[%s1081_s0 + $0x10] ss:$0 sm:$0xff]  ;;  %v644_v43 = vld [vmem:[%s1082_s1 + $0x80] sm:$0xff] }
  0x12   :  { %v124_v59 = vadd.f32 %v122_v47, %v108_v52  ;;  %v125_v60 = vadd.f32 %v123_v48, %v109_v53  ;;  %v646_v42 = vld [vmem:[%s1081_s0 + $0x38] ss:$0 sm:$0xff]  ;;  %v266_v46 = vmul.f32 %v642_v34, %v641_v36  ;;  %v267_v47 = vmul.f32 %v643_v35, %v641_v36  ;;  %v648_v48 = vld [vmem:[%s1081_s0 + $0x11] ss:$0 sm:$0xff]  ;;  %v649_v49 = vld [vmem:[%s1081_s0 + $0x39] ss:$0 sm:$0xff] }
  0x13   :  { %v647_v50 = vld [vmem:[%s1082_s1 + $0x88] sm:$0xff]  ;;  %v651_v51 = vld [vmem:[%s1081_s0 + $0x12] ss:$0 sm:$0xff]  ;;  %v652_v52 = vld [vmem:[%s1081_s0 + $0x3a] ss:$0 sm:$0xff]  ;;  %v283_v56 = vmul.f32 %v646_v42, %v644_v43 }
  0x14   :  { %v140_v2 = vadd.f32 %v138_v54, %v124_v59  ;;  %v141_v3 = vadd.f32 %v139_v55, %v125_v60  ;;  %v282_v55 = vmul.f32 %v645_v41, %v644_v43  ;;  %v650_v57 = vld [vmem:[%s1082_s1 + $0x90] sm:$0xff]  ;;  %v693_v58 = vld [vmem:[%s1081_s0 + $0x20] ss:$0 sm:$0xff]  ;;  %v694_v59 = vld [vmem:[%s1081_s0 + $0x48] ss:$0 sm:$0xff]  ;;  %v298_v60 = vmul.f32 %v648_v48, %v647_v50 }
  0x15   :  { %v655_v63 = vld [vmem:[%s1081_s0 + $0x3b] ss:$0 sm:$0xff]  ;;  %v692_v1 = vld [vmem:[%s1082_s1 + $0x100] sm:$0xff]  ;;  %v695_v8 = vld [vmem:[%s1082_s1 + $0x108] sm:$0xff] }
  0x16   :  { %v156_v9 = vadd.f32 %v154_v61, %v140_v2  ;;  %v157_v10 = vadd.f32 %v155_v62, %v141_v3  ;;  %v299_v61 = vmul.f32 %v649_v49, %v647_v50  ;;  %v654_v62 = vld [vmem:[%s1081_s0 + $0x13] ss:$0 sm:$0xff]  ;;  %v653_v0 = vld [vmem:[%s1082_s1 + $0x98] sm:$0xff]  ;;  %v696_v2 = vld [vmem:[%s1081_s0 + $0x21] ss:$0 sm:$0xff]  ;;  %v922_v6 = vmul.f32 %v693_v58, %v692_v1 }
  0x17   :  { %v697_v3 = vld [vmem:[%s1081_s0 + $0x49] ss:$0 sm:$0xff]  ;;  %v924_v7 = vmul.f32 %v694_v59, %v692_v1  ;;  %v935_v13 = vmul.f32 %v696_v2, %v695_v8  ;;  %v698_v15 = vld [vmem:[%s1082_s1 + $0x110] sm:$0xff]  ;;  %v701_v22 = vld [vmem:[%s1082_s1 + $0x118] sm:$0xff] }
  0x18   :  { %v172_v16 = vadd.f32 %v170_v4, %v156_v9  ;;  %v173_v17 = vadd.f32 %v171_v5, %v157_v10  ;;  %v699_v9 = vld [vmem:[%s1081_s0 + $0x22] ss:$0 sm:$0xff]  ;;  %v700_v10 = vld [vmem:[%s1081_s0 + $0x4a] ss:$0 sm:$0xff]  ;;  %v937_v14 = vmul.f32 %v697_v3, %v695_v8  ;;  %v662_v41 = vld [vmem:[%s1082_s1 + $0xb0] sm:$0xff] }
  0x19   :  { %v948_v20 = vmul.f32 %v699_v9, %v698_v15  ;;  %v950_v21 = vmul.f32 %v700_v10, %v698_v15  ;;  %v659_v34 = vld [vmem:[%s1082_s1 + $0xa8] sm:$0xff]  ;;  %v665_v48 = vld [vmem:[%s1082_s1 + $0xb8] sm:$0xff]  ;;  %v679_v15 = vld [vmem:[%s1081_s0 + $0x43] ss:$0 sm:$0xff] }
  0x1a   :  { %v188_v23 = vadd.f32 %v186_v11, %v172_v16  ;;  %v189_v24 = vadd.f32 %v187_v12, %v173_v17  ;;  %v314_v11 = vmul.f32 %v651_v51, %v650_v57  ;;  %v315_v12 = vmul.f32 %v652_v52, %v650_v57  ;;  %v702_v16 = vld [vmem:[%s1081_s0 + $0x23] ss:$0 sm:$0xff]  ;;  %v703_v17 = vld [vmem:[%s1081_s0 + $0x4b] ss:$0 sm:$0xff]  ;;  %v675_v3 = vld [vmem:[%s1081_s0 + $0x1a] ss:$0 sm:$0xff] }
  0x1b   :  { %v966_v27 = vmul.f32 %v703_v17, %v701_v22 }
  0x1c   :  { %v204_v30 = vadd.f32 %v202_v18, %v188_v23  ;;  %v205_v31 = vadd.f32 %v203_v19, %v189_v24  ;;  %v657_v23 = vld [vmem:[%s1081_s0 + $0x14] ss:$0 sm:$0xff]  ;;  %v658_v24 = vld [vmem:[%s1081_s0 + $0x3c] ss:$0 sm:$0xff] }
  0x1e   :  { %v220_v37 = vadd.f32 %v218_v25, %v204_v30  ;;  %v221_v38 = vadd.f32 %v219_v26, %v205_v31  ;;  %v656_v25 = vld [vmem:[%s1082_s1 + $0xa0] sm:$0xff]  ;;  %v964_v26 = vmul.f32 %v702_v16, %v701_v22  ;;  %v330_v30 = vmul.f32 %v654_v62, %v653_v0  ;;  %v671_v62 = vld [vmem:[%s1082_s1 + $0xc8] sm:$0xff]  ;;  %v677_v16 = vld [vmem:[%s1082_s1 + $0xd8] sm:$0xff] }
  0x1f   :  { %v331_v31 = vmul.f32 %v655_v63, %v653_v0 }
  0x20   :  { %v236_v44 = vadd.f32 %v234_v32, %v220_v37  ;;  %v237_v45 = vadd.f32 %v235_v33, %v221_v38  ;;  %v660_v32 = vld [vmem:[%s1081_s0 + $0x15] ss:$0 sm:$0xff]  ;;  %v661_v33 = vld [vmem:[%s1081_s0 + $0x3d] ss:$0 sm:$0xff]  ;;  %v346_v37 = vmul.f32 %v657_v23, %v656_v25  ;;  %v347_v38 = vmul.f32 %v658_v24, %v656_v25  ;;  %v681_v23 = vld [vmem:[%s1081_s0 + $0x1c] ss:$0 sm:$0xff] }
  0x21   :  { %v682_v24 = vld [vmem:[%s1081_s0 + $0x44] ss:$0 sm:$0xff] }
  0x22   :  { %v252_v53 = vadd.f32 %v250_v39, %v236_v44  ;;  %v253_v54 = vadd.f32 %v251_v40, %v237_v45  ;;  %v663_v39 = vld [vmem:[%s1081_s0 + $0x16] ss:$0 sm:$0xff]  ;;  %v664_v40 = vld [vmem:[%s1081_s0 + $0x3e] ss:$0 sm:$0xff]  ;;  %v362_v44 = vmul.f32 %v660_v32, %v659_v34  ;;  %v363_v45 = vmul.f32 %v661_v33, %v659_v34  ;;  %v680_v25 = vld [vmem:[%s1082_s1 + $0xe0] sm:$0xff] }
  0x23   :  { %v378_v51 = vmul.f32 %v663_v39, %v662_v41  ;;  %v379_v52 = vmul.f32 %v664_v40, %v662_v41  ;;  %v684_v32 = vld [vmem:[%s1081_s0 + $0x1d] ss:$0 sm:$0xff]  ;;  %v685_v33 = vld [vmem:[%s1081_s0 + $0x45] ss:$0 sm:$0xff]  ;;  %v683_v34 = vld [vmem:[%s1082_s1 + $0xe8] sm:$0xff] }
  0x24   :  { %v268_v4 = vadd.f32 %v266_v46, %v252_v53  ;;  %v269_v5 = vadd.f32 %v267_v47, %v253_v54  ;;  %v666_v46 = vld [vmem:[%s1081_s0 + $0x17] ss:$0 sm:$0xff]  ;;  %v667_v47 = vld [vmem:[%s1081_s0 + $0x3f] ss:$0 sm:$0xff]  ;;  %v669_v53 = vld [vmem:[%s1081_s0 + $0x18] ss:$0 sm:$0xff] }
  0x25   :  { %v670_v54 = vld [vmem:[%s1081_s0 + $0x40] ss:$0 sm:$0xff]  ;;  %v394_v58 = vmul.f32 %v666_v46, %v665_v48  ;;  %v395_v59 = vmul.f32 %v667_v47, %v665_v48  ;;  %v687_v39 = vld [vmem:[%s1081_s0 + $0x1e] ss:$0 sm:$0xff]  ;;  %v688_v40 = vld [vmem:[%s1081_s0 + $0x46] ss:$0 sm:$0xff] }
  0x26   :  { %v284_v18 = vadd.f32 %v282_v55, %v268_v4  ;;  %v285_v19 = vadd.f32 %v283_v56, %v269_v5  ;;  %v668_v55 = vld [vmem:[%s1082_s1 + $0xc0] sm:$0xff]  ;;  %v674_v5 = vld [vmem:[%s1082_s1 + $0xd0] sm:$0xff]  ;;  %v690_v46 = vld [vmem:[%s1081_s0 + $0x1f] ss:$0 sm:$0xff] }
  0x27   :  { %v410_v1 = vmul.f32 %v669_v53, %v668_v55  ;;  %v411_v2 = vmul.f32 %v670_v54, %v668_v55  ;;  %v676_v4 = vld [vmem:[%s1081_s0 + $0x42] ss:$0 sm:$0xff]  ;;  %v686_v41 = vld [vmem:[%s1082_s1 + $0xf0] sm:$0xff]  ;;  %v691_v47 = vld [vmem:[%s1081_s0 + $0x47] ss:$0 sm:$0xff] }
  0x28   :  { %v300_v28 = vadd.f32 %v298_v60, %v284_v18  ;;  %v301_v29 = vadd.f32 %v299_v61, %v285_v19  ;;  %v672_v60 = vld [vmem:[%s1081_s0 + $0x19] ss:$0 sm:$0xff]  ;;  %v673_v61 = vld [vmem:[%s1081_s0 + $0x41] ss:$0 sm:$0xff]  ;;  %v442_v19 = vmul.f32 %v675_v3, %v674_v5  ;;  %v443_v22 = vmul.f32 %v676_v4, %v674_v5 }
  0x29   :  { %v426_v10 = vmul.f32 %v672_v60, %v671_v62  ;;  %v689_v48 = vld [vmem:[%s1082_s1 + $0xf8] sm:$0xff] }
  0x2a   :  { %v316_v35 = vadd.f32 %v314_v11, %v300_v28  ;;  %v317_v36 = vadd.f32 %v315_v12, %v301_v29  ;;  %v427_v11 = vmul.f32 %v673_v61, %v671_v62  ;;  %v678_v12 = vld [vmem:[%s1081_s0 + $0x1b] ss:$0 sm:$0xff]  ;;  %v522_v55 = vmul.f32 %v690_v46, %v689_v48 }
  0x2c   :  { %v332_v42 = vadd.f32 %v330_v30, %v316_v35  ;;  %v333_v43 = vadd.f32 %v331_v31, %v317_v36  ;;  %v458_v30 = vmul.f32 %v678_v12, %v677_v16  ;;  %v459_v31 = vmul.f32 %v679_v15, %v677_v16 }
  0x2e   :  { %v348_v49 = vadd.f32 %v346_v37, %v332_v42  ;;  %v349_v50 = vadd.f32 %v347_v38, %v333_v43  ;;  %v474_v37 = vmul.f32 %v681_v23, %v680_v25  ;;  %v475_v38 = vmul.f32 %v682_v24, %v680_v25 }
  0x30   :  { %v364_v56 = vadd.f32 %v362_v44, %v348_v49  ;;  %v365_v57 = vadd.f32 %v363_v45, %v349_v50  ;;  %v490_v44 = vmul.f32 %v684_v32, %v683_v34  ;;  %v491_v45 = vmul.f32 %v685_v33, %v683_v34 }
  0x32   :  { %v380_v63 = vadd.f32 %v378_v51, %v364_v56  ;;  %v381_v0 = vadd.f32 %v379_v52, %v365_v57  ;;  %v506_v51 = vmul.f32 %v687_v39, %v686_v41  ;;  %v507_v52 = vmul.f32 %v688_v40, %v686_v41 }
  0x33   :  { %v523_v56 = vmul.f32 %v691_v47, %v689_v48 }
  0x34   :  { %v396_v8 = vadd.f32 %v394_v58, %v380_v63  ;;  %v397_v9 = vadd.f32 %v395_v59, %v381_v0 }
  0x36   :  { %v412_v17 = vadd.f32 %v410_v1, %v396_v8  ;;  %v413_v18 = vadd.f32 %v411_v2, %v397_v9 }
  0x38   :  { %v428_v28 = vadd.f32 %v426_v10, %v412_v17  ;;  %v429_v29 = vadd.f32 %v427_v11, %v413_v18 }
  0x3a   :  { %v444_v35 = vadd.f32 %v442_v19, %v428_v28  ;;  %v445_v36 = vadd.f32 %v443_v22, %v429_v29 }
  0x3c   :  { %v460_v42 = vadd.f32 %v458_v30, %v444_v35  ;;  %v461_v43 = vadd.f32 %v459_v31, %v445_v36 }
  0x3e   :  { %v476_v49 = vadd.f32 %v474_v37, %v460_v42  ;;  %v477_v50 = vadd.f32 %v475_v38, %v461_v43 }
  0x40   :  { %v492_v53 = vadd.f32 %v490_v44, %v476_v49  ;;  %v493_v54 = vadd.f32 %v491_v45, %v477_v50 }
  0x42   :  { %v508_v57 = vadd.f32 %v506_v51, %v492_v53  ;;  %v509_v58 = vadd.f32 %v507_v52, %v493_v54 }
  0x44   :  { %v524_v59 = vadd.f32 %v522_v55, %v508_v57  ;;  %v525_v60 = vadd.f32 %v523_v56, %v509_v58 }
  0x46   :  { %v540_v61 = vadd.f32 %v922_v6, %v524_v59  ;;  %v541_v62 = vadd.f32 %v924_v7, %v525_v60 }
  0x48   :  { %v556_v63 = vadd.f32 %v935_v13, %v540_v61  ;;  %v557_v0 = vadd.f32 %v937_v14, %v541_v62 }
  0x4a   :  { %v572_v1 = vadd.f32 %v948_v20, %v556_v63  ;;  %v573_v2 = vadd.f32 %v950_v21, %v557_v0 }
  0x4c   :  { %v588_v3 = vadd.f32 %v964_v26, %v572_v1  ;;  %v589_v4 = vadd.f32 %v966_v27, %v573_v2 }
  0x4e   :  { %591 = vst.msk [vmem:[%s1084_s3] sm:$0xff] %vm590_vm0, %v588_v3  ;;  %592 = vst.msk [vmem:[%s1084_s3 + $0x8] sm:$0xff] %vm590_vm0, %v589_v4 }

</bundles_post_ra>
